<compile_context>
chip_gen: v5e
topology: v5e:2x2
jax: 0.10.0
libtpu: 0.0.40
codegen_flags: <defaults>
</compile_context>

<pallas_src>
import math

import jax
import jax.numpy as jnp
from jax.experimental import pallas as pl
from jax.experimental.pallas import tpu as pltpu


def _timestep_embedder_kernel(t_ref, c_ref, w_ref, out_ref):
    """Fused sinusoid -> Linear -> SiLU for one batch tile.

    t_ref   : (TB, 1)    timesteps (f32)
    c_ref   : (3, dim)   row 0: frequencies (sin half + cos half, zero-padded)
                         row 1: phases (0 for sin half, pi/2 for cos half)
                         row 2: fc bias
    w_ref   : (dim, dim) fc weight, PyTorch (out_features, in_features) layout
    out_ref : (TB, dim)
    """
    freq = c_ref[0:1, :]                                    # (1, dim)
    phase = c_ref[1:2, :]                                   # (1, dim)
    bias = c_ref[2:3, :]                                    # (1, dim)

    ang = t_ref[...] * freq + phase                         # (TB, dim)
    emb = jnp.sin(ang).astype(w_ref.dtype)                  # cat([sin, cos], 1)

    # emb @ W^T with f32 accumulation; contraction on W's last (in_features)
    # axis so no wrapper-side transpose copy is needed.
    y = jax.lax.dot_general(
        emb, w_ref[...],
        dimension_numbers=(((1,), (1,)), ((), ())),
        preferred_element_type=jnp.float32)
    y = y + bias

    # SiLU: y * sigmoid(y); approx reciprocal runs on the EUP slot.
    sig = pl.reciprocal(1.0 + jnp.exp(-y), approx=True)
    out_ref[...] = (y * sig).astype(out_ref.dtype)


def _round_up(x, m):
    return ((x + m - 1) // m) * m


def timestep_embedder_forward(timestep, weight, bias, *, block_b=512,
                              compute_dtype=jnp.bfloat16):
    """Pallas implementation of TimestepEmbedder.forward.

    timestep : (B,) or (B, 1)
    weight   : (dim, dim)  PyTorch nn.Linear layout (out_features, in_features)
    bias     : (dim,)
    Returns  : (B, dim) float32.
    """
    if timestep.ndim == 1:
        timestep = timestep[:, None]
    B = timestep.shape[0]
    dim = weight.shape[0]
    half_dim = dim // 2

    # ---- trace-time constants (one merged (3, dim) operand) ---------------
    denom = max(half_dim - 1, 1)   # guard dim<=3 (reference would produce NaN)
    freqs = jnp.exp(
        jnp.arange(half_dim, dtype=jnp.float32) * -(math.log(10000.0) / denom))
    # Frequencies for the sin half and (via phase shift) the cos half.  For
    # odd dim the trailing slot stays zero -> sin(0) == 0, matching the
    # reference's zero pad column exactly.
    freq2 = (jnp.zeros((dim,), jnp.float32)
             .at[:half_dim].set(freqs)
             .at[half_dim:2 * half_dim].set(freqs))
    phase = jnp.zeros((dim,), jnp.float32).at[half_dim:2 * half_dim].set(
        math.pi / 2.0)
    consts = jnp.stack([freq2, phase, bias.astype(jnp.float32)], axis=0)  # (3, dim)

    # Weight: native layout, cast once to the MXU compute dtype.
    w = weight.astype(compute_dtype)

    # ---- batch tiling ------------------------------------------------------
    n_tiles = max(1, -(-B // max(block_b, 8)))          # ceil(B / block_b)
    tb = max(8, _round_up(-(-B // n_tiles), 8))         # even split, sublane-aligned
    bp = n_tiles * tb
    t_pad = jnp.zeros((bp, 1), jnp.float32).at[:B].set(timestep.astype(jnp.float32))

    # ---- VMEM budget (double-buffered blocks + in-kernel temporaries) ------
    w_bytes = dim * dim * jnp.dtype(compute_dtype).itemsize
    tile_bytes = tb * dim * 4
    est = (2 * w_bytes + 2 * 3 * dim * 4 + 2 * tb * 4
           + 2 * tile_bytes + 4 * tile_bytes)
    vmem_limit = int(min(64 * 1024 * 1024, max(2 * est, 4 * 1024 * 1024)))

    out = pl.pallas_call(
        _timestep_embedder_kernel,
        out_shape=jax.ShapeDtypeStruct((bp, dim), jnp.float32),
        grid=(n_tiles,),
        in_specs=[
            pl.BlockSpec((tb, 1), lambda i: (i, 0)),        # timesteps (tiled)
            pl.BlockSpec((3, dim), lambda i: (0, 0)),       # freqs/phase/bias
            pl.BlockSpec((dim, dim), lambda i: (0, 0)),     # fc weight (resident)
        ],
        out_specs=pl.BlockSpec((tb, dim), lambda i: (i, 0)),
        compiler_params=pltpu.CompilerParams(
            dimension_semantics=("parallel",),
            vmem_limit_bytes=vmem_limit),
    )(t_pad, consts, w)

    return out[:B]


def timestep_embedder_reference(timestep, weight, bias):
    """Pure-JAX reference matching the PyTorch module's math (f32)."""
    if timestep.ndim == 1:
        timestep = timestep[:, None]
    dim = weight.shape[0]
    half_dim = dim // 2
    freqs = jnp.exp(
        jnp.arange(half_dim, dtype=jnp.float32)
        * -(math.log(10000.0) / (half_dim - 1)))
    ang = timestep.astype(jnp.float32) * freqs[None, :]
    emb = jnp.concatenate([jnp.sin(ang), jnp.cos(ang)], axis=1)
    if dim % 2 == 1:
        emb = jnp.pad(emb, ((0, 0), (0, 1)))
    y = emb @ weight.astype(jnp.float32).T + bias.astype(jnp.float32)[None, :]
    return y * jax.nn.sigmoid(y)


if __name__ == "__main__":
    # Small, module-consistent shapes: batch=2, dim=128 (lane-dense output).
    B, dim = 2, 128

    key = jax.random.PRNGKey(0)
    kt, kw, kb = jax.random.split(key, 3)
    timestep = jax.random.uniform(kt, (B,), jnp.float32, 0.0, 1000.0)
    # nn.Linear(dim, dim) parameters, PyTorch (out_features, in_features) layout.
    weight = jax.random.normal(kw, (dim, dim), jnp.float32) * (1.0 / math.sqrt(dim))
    bias = jax.random.normal(kb, (dim,), jnp.float32) * 0.01

    ref = jax.block_until_ready(timestep_embedder_reference(timestep, weight, bias))

    # f32 MXU path: tight check against the pure-JAX reference.
    out_f32 = jax.block_until_ready(
        timestep_embedder_forward(timestep, weight, bias, compute_dtype=jnp.float32))
    assert out_f32.shape == (B, dim), out_f32.shape
    err_f32 = float(jnp.max(jnp.abs(out_f32 - ref)))
    assert jnp.allclose(out_f32, ref, atol=5e-3, rtol=5e-3), err_f32

    # Default bf16-weight path (halves weight DMA): looser tolerance.
    out_bf16 = jax.block_until_ready(timestep_embedder_forward(timestep, weight, bias))
    assert out_bf16.shape == (B, dim), out_bf16.shape
    err_bf16 = float(jnp.max(jnp.abs(out_bf16 - ref)))
    assert jnp.allclose(out_bf16, ref, atol=2e-2, rtol=2e-2), err_bf16

    print("KERNEL_OK")
</pallas_src>

<mosaic_0001>
module attributes {stable_mosaic.version = 11 : i64} {
  func.func @_timestep_embedder_kernel(%arg0: i32, %arg1: memref<8x1xf32, #tpu.memory_space<vmem>>, %arg2: memref<3x128xf32, #tpu.memory_space<vmem>>, %arg3: memref<128x128xf32, #tpu.memory_space<vmem>>, %arg4: memref<8x128xf32, #tpu.memory_space<vmem>>) attributes {dimension_semantics = [#tpu.dimension_semantics<parallel>], iteration_bounds = array<i64: 1>, scalar_prefetch = 0 : i64, scratch_operands = 0 : i64, tpu.core_type = #tpu.core_type<tc>, window_params = [{transform_indices = @transform_0, window_bounds = array<i64: 8, 1>}, {pipeline_mode = #tpu.pipeline_mode<synchronous>, transform_indices = @transform_1, window_bounds = array<i64: 3, 128>}, {pipeline_mode = #tpu.pipeline_mode<synchronous>, transform_indices = @transform_2, window_bounds = array<i64: 128, 128>}, {transform_indices = @transform_3, window_bounds = array<i64: 8, 128>}]} {
    %c0 = arith.constant 0 : index
    %c0_0 = arith.constant 0 : index
    %0 = vector.load %arg2[%c0, %c0_0] : memref<3x128xf32, #tpu.memory_space<vmem>>, vector<1x128xf32>
    %c1 = arith.constant 1 : index
    %c0_1 = arith.constant 0 : index
    %1 = vector.load %arg2[%c1, %c0_1] : memref<3x128xf32, #tpu.memory_space<vmem>>, vector<1x128xf32>
    %c2 = arith.constant 2 : index
    %c0_2 = arith.constant 0 : index
    %2 = vector.load %arg2[%c2, %c0_2] : memref<3x128xf32, #tpu.memory_space<vmem>>, vector<1x128xf32>
    %c0_3 = arith.constant 0 : index
    %c0_4 = arith.constant 0 : index
    %3 = vector.load %arg1[%c0_3, %c0_4] : memref<8x1xf32, #tpu.memory_space<vmem>>, vector<8x1xf32>
    %4 = vector.broadcast %3 : vector<8x1xf32> to vector<8x128xf32>
    %5 = vector.broadcast %0 : vector<1x128xf32> to vector<8x128xf32>
    %6 = arith.mulf %4, %5 : vector<8x128xf32>
    %7 = vector.broadcast %1 : vector<1x128xf32> to vector<8x128xf32>
    %8 = arith.addf %6, %7 : vector<8x128xf32>
    %9 = math.sin %8 : vector<8x128xf32>
    %c0_5 = arith.constant 0 : index
    %c0_6 = arith.constant 0 : index
    %10 = vector.load %arg3[%c0_5, %c0_6] : memref<128x128xf32, #tpu.memory_space<vmem>>, vector<128x128xf32>
    %cst = arith.constant dense<0.000000e+00> : vector<8x128xf32>
    %11 = tpu.matmul %9, %10, %cst {dimension_numbers = #tpu.dot_dimension_numbers<[1], [1], [0], [0], [0, 0, 1, 0], [], []>} : vector<8x128xf32>, vector<128x128xf32>, vector<8x128xf32> -> vector<8x128xf32>
    %12 = vector.broadcast %2 : vector<1x128xf32> to vector<8x128xf32>
    %13 = arith.addf %11, %12 : vector<8x128xf32>
    %cst_7 = arith.constant 0.000000e+00 : f32
    %14 = vector.broadcast %cst_7 : f32 to vector<8x128xf32>
    %15 = arith.subf %14, %13 : vector<8x128xf32>
    %16 = math.exp %15 : vector<8x128xf32>
    %cst_8 = arith.constant 1.000000e+00 : f32
    %17 = vector.broadcast %cst_8 : f32 to vector<8x128xf32>
    %18 = arith.addf %17, %16 : vector<8x128xf32>
    %19 = tpu.reciprocal %18 {approx = true} : vector<8x128xf32> -> vector<8x128xf32>
    %20 = arith.mulf %13, %19 : vector<8x128xf32>
    %c0_9 = arith.constant 0 : index
    %c0_10 = arith.constant 0 : index
    %21 = vector.load %arg4[%c0_9, %c0_10] : memref<8x128xf32, #tpu.memory_space<vmem>>, vector<8x128xf32>
    tpu.vector_store %arg4[%c0_9, %c0_10], %20 {strides = array<i32>} : memref<8x128xf32, #tpu.memory_space<vmem>>, vector<8x128xf32>,
    return
  }
  func.func @transform_0(%arg0: i32) -> (i32, i32) {
    %c0_i32 = arith.constant 0 : i32
    %c0_i32_0 = arith.constant 0 : i32
    return %arg0, %c0_i32 : i32, i32
  }
  func.func @transform_1(%arg0: i32) -> (i32, i32) {
    %c0_i32 = arith.constant 0 : i32
    %c0_i32_0 = arith.constant 0 : i32
    %c0_i32_1 = arith.constant 0 : i32
    return %c0_i32, %c0_i32_0 : i32, i32
  }
  func.func @transform_2(%arg0: i32) -> (i32, i32) {
    %c0_i32 = arith.constant 0 : i32
    %c0_i32_0 = arith.constant 0 : i32
    %c0_i32_1 = arith.constant 0 : i32
    return %c0_i32, %c0_i32_0 : i32, i32
  }
  func.func @transform_3(%arg0: i32) -> (i32, i32) {
    %c0_i32 = arith.constant 0 : i32
    %c0_i32_0 = arith.constant 0 : i32
    return %arg0, %c0_i32 : i32, i32
  }
}

</mosaic_0001>

<bundles_post_ra>
// kernel: tpu_custom_call.1
= control target key start
LH: loop header
LB: loop body
LE: loop exit
PB: predicated region body
PF: predicated region fallthrough
CT: control target
= control target key end

     0   :  { %8 = vsyncpa [#allocation3], 0  ;;  %s453_s0 = inlined_call_operand.vmem [shape: f32[8,1], index: 0, kind: input, shape index: {}]   ;;  %s454_s1 = inlined_call_operand.vmem [shape: f32[3,128], index: 1, kind: input, shape index: {}]   ;;  %s455_s2 = inlined_call_operand.hbm [shape: f32[128,128], index: 2, kind: input, shape index: {}]   ;;  %s456_s3 = inlined_call_operand.hbm [shape: f32[8,128], index: 3, kind: output, shape index: {}]  }
   0x1   :  { %9 = vsyncpa [#allocation4], 0  ;;  %s18_s14 = sshll.u32 %s455_s2, 4  ;;  %s334_s15 = smov [#allocation2]   ;;  %s19_s14 = int_to_ptr.hbm [resolvable:$true] %s18_s14 }
   0x2   :  { %s20_s16 = sshll.u32 %s334_s15, 4  ;;  %s335_s17 = smov 128   ;;  %s21_s16 = int_to_ptr.vmem [resolvable:$true] %s20_s16 }
   0x3   :  { %s336_s18 = smov 8  }
   0x4   :  { %26 = dma.hbm_to_vmem [thread:$0]  %s19_s14, 2048, %s21_s16, [#allocation3], %s335_s17, %s335_s17, %s336_s18  }
   0x5   :  { %330 = dma.done.wait [#allocation3], 2048  }
   0x6   :  { %331 = vsyncadd [#allocation3], 4294965248  ;;  %v337_v0 = vmov 0   ;;  %v34_v1 = vld [vmem:[%s453_s0] sm:$0xff]  ;;  %v214_v2 = vld [vmem:[#allocation2 + $0x78] sm:$0xff]  ;;  %s344_s25 = smov [#allocation5]  }
   0x7   :  { %274 = vset.pattern.permute.xlu0 %v337_v0  ;;  %216 = vmatpush.xpose.msra.mxu0 %v214_v2  ;;  %v213_v3 = vld [vmem:[#allocation2 + $0x70] sm:$0xff]  ;;  %v212_v4 = vld [vmem:[#allocation2 + $0x68] sm:$0xff]  ;;  %v211_v5 = vld [vmem:[#allocation2 + $0x60] sm:$0xff]  ;;  %v338_v27 = vmov 683565275   ;;  %s248_s26 = sshll.u32 %s344_s25, 4  ;;  %s249_s26 = int_to_ptr.vmem [resolvable:$true] %s248_s26 }
   0x8   :  { %37 = vperm.xlu0 %274, %v34_v1   ;;  %v275_v6 = vld [vmem:[%s454_s1] ss:$0 sm:$0xff]  ;;  %v276_v7 = vld [vmem:[%s454_s1 + $0x1] ss:$0 sm:$0xff]  ;;  %v210_v8 = vld [vmem:[#allocation2 + $0x58] sm:$0xff]  ;;  %s250_s29 = sshll.u32 %s456_s3, 4  ;;  %s251_s29 = int_to_ptr.hbm [resolvable:$true] %s250_s29 }
   0x9   :  { %v209_v12 = vld [vmem:[#allocation2 + $0x50] sm:$0xff]  ;;  %v208_v15 = vld [vmem:[#allocation2 + $0x48] sm:$0xff]  ;;  %v207_v19 = vld [vmem:[#allocation2 + $0x40] sm:$0xff]  ;;  %v339_v29 = vmov 2475754826  }
   0xa   :  { %v206_v23 = vld [vmem:[#allocation2 + $0x38] sm:$0xff]  ;;  %v205_v31 = vld [vmem:[#allocation2 + $0x30] sm:$0xff]  ;;  %v340_v33 = vmov 2131351028   ;;  %v341_v36 = vmov 2102212464  }
   0xb   :  { %217 = vmatpush.xpose.msra.mxu0 %v213_v3  ;;  %v342_v39 = vmov 920167782   ;;  %v343_v42 = vmov 1326507024   ;;  %v204_v50 = vld [vmem:[#allocation2 + $0x28] sm:$0xff]  ;;  %v203_v61 = vld [vmem:[#allocation2 + $0x20] sm:$0xff] }
   0xf   :  { %218 = vmatpush.xpose.msra.mxu0 %v212_v4 }
  0x13   :  { %219 = vmatpush.xpose.msra.mxu0 %v211_v5 }
  0x17   :  { %220 = vmatpush.xpose.msra.mxu0 %v210_v8 }
  0x1b   :  { %221 = vmatpush.xpose.msra.mxu0 %v209_v12 }
  0x1f   :  { %222 = vmatpush.xpose.msra.mxu0 %v208_v15 }
  0x23   :  { %223 = vmatpush.xpose.msra.mxu0 %v207_v19 }
  0x27   :  { %224 = vmatpush.xpose.msra.mxu0 %v206_v23 }
  0x2b   :  { %225 = vmatpush.xpose.msra.mxu0 %v205_v31 }
  0x2f   :  { %226 = vmatpush.xpose.msra.mxu0 %v204_v50 }
  0x33   :  { %227 = vmatpush.xpose.msra.mxu0 %v203_v61 }
  0x7a   :  { %v38_v9 = vpop.permute.xlu0 %37 }
  0x7b   :  { %v41_v10 = vmul.f32 %v275_v6, %v38_v9 }
  0x7d   :  { %v378_v11 = vadd.f32 %v276_v7, %v41_v10  ;;  %v202_v7 = vld [vmem:[#allocation2 + $0x18] sm:$0xff] }
  0x7e   :  { %228 = vmatpush.xpose.msra.mxu0 %v202_v7 }
  0x7f   :  { %v47_v13 = vand.u32 2139095040, %v378_v11  ;;  %v44_v17 = vand.u32 2147483647, %v378_v11  ;;  %vm46_vm12 = vcmp.lt.s32.totalorder %v378_v11, 0 }
  0x81   :  { %v48_v14 = vshrl.u32 %v47_v13, 23  ;;  %v51_v21 = vand.u32 8388607, %v44_v17  ;;  %vm45_vm13 = vcmp.le.f32.partialorder %v44_v17, 0.7853982 }
  0x83   :  { %v260_v16 = vadd.s32 4294967169, %v48_v14  ;;  %v52_v26 = vor.u32 8388608, %v51_v21  ;;  %v201_v21 = vld [vmem:[#allocation2 + $0x10] sm:$0xff] }
  0x84   :  { %229 = vmatpush.xpose.msra.mxu0 %v201_v21 }
  0x85   :  { %v54_v18 = vadd.s32 1, %v260_v16  ;;  %v399_v49 = vshll.u32 %v52_v26, 8 }
  0x87   :  { %vm55_vm0 = vcmp.gt.s32.totalorder %v54_v18, 0  ;;  %v93_v59 = vand.u32 65535, %v399_v49  ;;  %v94_v60 = vshrl.u32 %v399_v49, 16 }
  0x88   :  { %v56_v20 = vsel %vm55_vm0, %v54_v18, 0 }
  0x89   :  { %v58_v22 = vand.u32 31, %v56_v20  ;;  %v386_v25 = vshrl.u32 %v56_v20, 5 }
  0x8b   :  { %v384_v24 = vsub.s32 32, %v58_v22  ;;  %v61_v28 = vshll.u32 %v338_v27, %v58_v22  ;;  %v64_v30 = vshll.u32 %v339_v29, %v58_v22  ;;  %v67_v35 = vshll.u32 %v340_v33, %v58_v22 }
  0x8c   :  { %v70_v38 = vshll.u32 %v341_v36, %v58_v22  ;;  %v73_v41 = vshll.u32 %v342_v39, %v58_v22  ;;  %vm76_vm1 = vcmp.lt.s32.totalorder %v386_v25, 1  ;;  %vm79_vm2 = vcmp.lt.s32.totalorder %v386_v25, 4 }
  0x8d   :  { %v62_v32 = vshrl.u32 %v339_v29, %v384_v24  ;;  %v65_v34 = vshrl.u32 %v340_v33, %v384_v24  ;;  %v68_v37 = vshrl.u32 %v341_v36, %v384_v24  ;;  %v71_v40 = vshrl.u32 %v342_v39, %v384_v24  ;;  %v200_v36 = vld [vmem:[#allocation2 + $0x8] sm:$0xff] }
  0x8e   :  { %v74_v43 = vshrl.u32 %v343_v42, %v384_v24  ;;  %vm78_vm3 = vcmp.lt.s32.totalorder %v386_v25, 3  ;;  %vm77_vm4 = vcmp.lt.s32.totalorder %v386_v25, 2  ;;  %230 = vmatpush.xpose.msra.mxu0 %v200_v36 }
  0x8f   :  { %v394_v44 = vor.u32 %v62_v32, %v61_v28  ;;  %v396_v45 = vor.u32 %v65_v34, %v64_v30  ;;  %v69_v46 = vor.u32 %v68_v37, %v67_v35  ;;  %v72_v47 = vor.u32 %v71_v40, %v70_v38 }
  0x90   :  { %v75_v48 = vor.u32 %v74_v43, %v73_v41  ;;  %v60_v30 = vshrl.u32 %v338_v27, %v384_v24 }
  0x91   :  { %v84_v51 = vsel %vm76_vm1, %v394_v44, %v396_v45  ;;  %v88_v52 = vsel %vm76_vm1, %v396_v45, %v69_v46  ;;  %v85_v53 = vsel %vm79_vm2, %v72_v47, 920167782  ;;  %v81_v26 = vsel %vm79_vm2, %v69_v46, 2102212464 }
  0x92   :  { %v89_v54 = vsel %vm79_vm2, %v75_v48, 1326507024  ;;  %v86_v55 = vsel %vm78_vm3, %v69_v46, %v85_v53  ;;  %v80_v37 = vsel %vm76_vm1, %v60_v30, %v394_v44  ;;  %v82_v38 = vsel %vm78_vm3, %v396_v45, %v81_v26  ;;  %v199_v46 = vld [vmem:[#allocation2] sm:$0xff] }
  0x93   :  { %v90_v56 = vsel %vm78_vm3, %v72_v47, %v89_v54  ;;  %v87_v57 = vsel %vm77_vm4, %v84_v51, %v86_v55  ;;  %231 = vmatpush.xpose.msra.mxu0 %v199_v46  ;;  %vm187_vm1 = vweird.f32 %v378_v11 }
  0x94   :  { %v91_v58 = vsel %vm77_vm4, %v88_v52, %v90_v56  ;;  %v117_v1 = vand.u32 65535, %v87_v57  ;;  %v118_v2 = vshrl.u32 %v87_v57, 16 }
  0x95   :  { %v95_v62 = vand.u32 65535, %v91_v58  ;;  %v96_v63 = vshrl.u32 %v91_v58, 16 }
  0x96   :  { %v120_v5 = vmul.u32 %v118_v2, %v93_v59  ;;  %v121_v6 = vmul.u32 %v117_v1, %v94_v60  ;;  %v119_v12 = vmul.u32 %v117_v1, %v93_v59  ;;  %v122_v16 = vmul.u32 %v118_v2, %v94_v60 }
  0x97   :  { %v98_v3 = vmul.u32 %v96_v63, %v93_v59  ;;  %v99_v4 = vmul.u32 %v95_v62, %v94_v60  ;;  %v97_v8 = vmul.u32 %v95_v62, %v93_v59  ;;  %v100_v10 = vmul.u32 %v96_v63, %v94_v60 }
  0x98   :  { %v123_v13 = vshll.u32 %v120_v5, 16  ;;  %v125_v19 = vshll.u32 %v121_v6, 16  ;;  %v124_v34 = vshrl.u32 %v120_v5, 16  ;;  %v126_v41 = vshrl.u32 %v121_v6, 16 }
  0x99   :  { %v101_v9 = vshll.u32 %v98_v3, 16  ;;  %v103_v14 = vshll.u32 %v99_v4, 16  ;;  %v102_v31 = vshrl.u32 %v98_v3, 16  ;;  %v104_v39 = vshrl.u32 %v99_v4, 16 }
  0x9a   :  { %vm127_vm6 = vc.u32 %v119_v12, %v123_v13  ;;  %v129_v20 = vadd.s32 %v123_v13, %v119_v12 }
  0x9b   :  { %vm105_vm5 = vc.u32 %v97_v8, %v101_v9  ;;  %v107_v15 = vadd.s32 %v101_v9, %v97_v8  ;;  %v128_v23 = vsel %vm127_vm6, 1, %v337_v0 }
  0x9c   :  { %v106_v18 = vsel %vm105_vm5, 1, %v337_v0  ;;  %v130_v29 = vadd.s32 %v128_v23, %v122_v16  ;;  %vm131_vm8 = vc.u32 %v129_v20, %v125_v19  ;;  %v133_v42 = vadd.s32 %v129_v20, %v125_v19 }
  0x9d   :  { %v108_v22 = vadd.s32 %v106_v18, %v100_v10  ;;  %vm109_vm7 = vc.u32 %v107_v15, %v103_v14  ;;  %v132_v33 = vsel %vm131_vm8, 1, %v337_v0 }
  0x9e   :  { %v110_v28 = vsel %vm109_vm7, 1, %v337_v0  ;;  %v134_v35 = vadd.s32 %v132_v33, %v130_v29  ;;  %v83_v0 = vsel %vm77_vm4, %v80_v37, %v82_v38  ;;  %v277_v38 = vld [vmem:[%s454_s1 + $0x2] ss:$0 sm:$0xff] }
  0x9f   :  { %v112_v32 = vadd.s32 %v110_v28, %v108_v22  ;;  %v137_v44 = vmul.u32 %v399_v49, %v83_v0 }
  0xa0   :  { %v135_v24 = vadd.s32 %v134_v35, %v124_v34 }
  0xa1   :  { %v113_v40 = vadd.s32 %v112_v32, %v102_v31 }
  0xa2   :  { %v136_v43 = vadd.s32 %v135_v24, %v126_v41 }
  0xa3   :  { %v114_v27 = vadd.s32 %v113_v40, %v104_v39 }
  0xa4   :  { %v140_v47 = vadd.s32 1, %v136_v43 }
  0xa5   :  { %vm139_vm9 = vc.u32 %v114_v27, %v133_v42  ;;  %v138_v58 = vadd.s32 %v133_v42, %v114_v27 }
  0xa6   :  { %v141_v48 = vsel %vm139_vm9, %v140_v47, %v136_v43 }
  0xa7   :  { %v142_v50 = vadd.s32 %v141_v48, %v137_v44 }
  0xa9   :  { %v143_v45 = vadd.s32 536870912, %v142_v50 }
  0xab   :  { %v144_v51 = vshrl.u32 %v143_v45, 30 }
  0xad   :  { %v145_v52 = vshll.u32 %v144_v51, 30  ;;  %v168_v8 = vsub.s32 4, %v144_v51 }
  0xaf   :  { %v146_v53 = vsub.s32 %v142_v50, %v145_v52  ;;  %v169_v14 = vsel %vm46_vm12, %v168_v8, %v144_v51 }
  0xb0   :  { %v171_v18 = vsel %vm45_vm13, 0, %v169_v14 }
  0xb1   :  { %vm147_vm10 = vcmp.lt.s32.totalorder %v146_v53, 0  ;;  %v148_v54 = vsub.s32 0, %v146_v53  ;;  %v188_v23 = vadd.s32 3, %v171_v18 }
  0xb3   :  { %v149_v55 = vsel %vm147_vm10, %v148_v54, %v146_v53  ;;  %v189_v30 = vand.u32 3, %v188_v23 }
  0xb4   :  { %v150_v56 = vclz %v149_v55 }
  0xb5   :  { %vm191_vm14 = vcmp.eq.s32.totalorder %v189_v30, 0  ;;  %vm194_vm15 = vcmp.eq.s32.totalorder %v189_v30, 2  ;;  %vm190_vm0 = vcmp.lt.s32.totalorder %v189_v30, 2 }
  0xb6   :  { %v261_v57 = vadd.s32 4294967294, %v150_v56 }
  0xb8   :  { %vm262_vm11 = vcmp.lt.s32.totalorder %v261_v57, 0 }
  0xb9   :  { %v153_v25 = vsel %vm262_vm11, 0, %v261_v57 }
  0xba   :  { %v154_v59 = vsub.s32 32, %v153_v25  ;;  %v158_v60 = vsub.s32 4294967266, %v153_v25  ;;  %v155_v61 = vshll.u32 %v146_v53, %v153_v25 }
  0xbc   :  { %v156_v62 = vshrl.u32 %v138_v58, %v154_v59  ;;  %v159_v49 = vadd.s32 127, %v158_v60 }
  0xbe   :  { %v157_v63 = vor.u32 %v156_v62, %v155_v61  ;;  %v160_v1 = vshll.u32 %v159_v49, 23 }
  0xc0   :  { %v161_v2 = vor.u32 4788187, %v160_v1  ;;  %v164_v4 = vcvt.s32.f32 %v157_v63 }
  0xc2   :  { %v162_v3 = vand.u32 2147483647, %v161_v2 }
  0xc4   :  { %v165_v5 = vmul.f32 %v164_v4, %v162_v3 }
  0xc6   :  { %v166_v6 = vxor.u32 2147483648, %v165_v5 }
  0xc8   :  { %v167_v7 = vsel %vm46_vm12, %v166_v6, %v165_v5 }
  0xc9   :  { %v170_v9 = vsel %vm45_vm13, %v378_v11, %v167_v7 }
  0xca   :  { %v172_v10 = vmul.f32 %v170_v9, %v170_v9 }
  0xcc   :  { %v173_v12 = vmul.f32 -0.001358992, %v172_v10  ;;  %v180_v13 = vmul.f32 -0.00019511016, %v172_v10 }
  0xce   :  { %v174_v15 = vadd.f32 0.041655596, %v173_v12  ;;  %v181_v16 = vadd.f32 0.008332121, %v180_v13 }
  0xd0   :  { %v175_v19 = vmul.f32 %v174_v15, %v172_v10  ;;  %v182_v20 = vmul.f32 %v181_v16, %v172_v10 }
  0xd2   :  { %v176_v21 = vadd.f32 -0.4999988, %v175_v19  ;;  %v183_v22 = vadd.f32 -0.16666654, %v182_v20 }
  0xd4   :  { %v177_v26 = vmul.f32 %v176_v21, %v172_v10  ;;  %v184_v28 = vmul.f32 %v183_v22, %v172_v10 }
  0xd6   :  { %v178_v29 = vadd.f32 1.0, %v177_v26  ;;  %v185_v17 = vadd.f32 1.0, %v184_v28 }
  0xd8   :  { %v186_v31 = vmul.f32 %v185_v17, %v170_v9  ;;  %v195_v32 = vxor.u32 2147483648, %v178_v29 }
  0xda   :  { %v192_v33 = vxor.u32 2147483648, %v186_v31  ;;  %v196_v35 = vsel %vm194_vm15, %v195_v32, %v186_v31 }
  0xdc   :  { %v193_v34 = vsel %vm191_vm14, %v178_v29, %v192_v33 }
  0xdd   :  { %v197_v36 = vsel %vm190_vm0, %v193_v34, %v196_v35 }
  0xde   :  { %v198_v37 = vsel %vm187_vm1, nan, %v197_v36 }
  0xdf   :  { %232 = vmatmul.f32.vlgmr.msra.gmra.mxu0 %v198_v37 }
 0x15c   :  { %v233_v39 = vpop.f32.mrf.mxu0 }
 0x15d   :  { %v234_v40 = vadd.f32 %v277_v38, %v233_v39 }
 0x15f   :  { %v236_v41 = vsub.f32 0.0, %v234_v40 }
 0x161   :  { %v237_v24 = vmul.f32 1.442695, %v236_v41 }
 0x163   :  { %278 = vpow2.f32 %v237_v24 }
 0x169   :  { %v279_v27 = vpop.eup %278 }
 0x16a   :  { %v239_v42 = vadd.f32 1.0, %v279_v27 }
 0x16c   :  { %280 = vrcp.f32 %v239_v42 }
 0x172   :  { %v281_v11 = vpop.eup %280 }
 0x173   :  { %v241_v0 = vmul.f32 %v281_v11, %v234_v40 }
 0x175   :  { %242 = vst [vmem:[#allocation5] sm:$0xff] %v241_v0 }
 0x176   :  { %253 = dma.vmem_to_hbm [thread:$0]  %s249_s26, 128, %s251_s29, [#allocation4]  }
 0x177   :  { %332 = dma.done.wait [#allocation4], 128  }
 0x178   :  { %333 = vsyncadd [#allocation4], 4294967168 }
 0x179   :  { %258 = vsyncpa [#allocation3], 1 }
 0x17a   :  { %259 = vsyncpa [#allocation4], 1 }

</bundles_post_ra>
